<compile_context>
chip_gen: v7x
topology: tpu7x:2x2x1
jax: 0.10.0
libtpu: 0.0.40
codegen_flags: <defaults>
</compile_context>

<pallas_src>
import functools

import jax
import jax.numpy as jnp
from jax.experimental import pallas as pl
from jax.experimental.pallas import tpu as pltpu


def _round_up(x, m):
    return (x + m - 1) // m * m


def _device_kind():
    try:
        return jax.devices()[0].device_kind.lower()
    except Exception:
        return ""


def _auto_tile_rows(batch, granule=8, max_rows=1024):
    """Pick the batch tile per generation.

    v5e/v6e (1 TensorCore): fewest, biggest tiles (<=1024 rows; measured
    sweet spot for mem-bound tiled kernels).
    v7x (2 TensorCores, 64 MiB VMEM): split into >=2 'parallel' tiles so the
    second core does work, same row cap keeps the working set modest.
    """
    bg = _round_up(batch, granule)
    if "v7" in _device_kind():
        half = _round_up(pl.cdiv(bg, 2), granule)
        return max(granule, min(half, max_rows))
    return max(granule, min(bg, max_rows))


def default_compute_dtype():
    """bf16 MXU operands on every TPU generation (f32 accumulation is kept in
    the kernel); f32 fallback off-TPU / unknown backend."""
    return jnp.bfloat16 if "tpu" in _device_kind() else jnp.float32


def actor_kernel(x_ref, w1_ref, b1_ref, w2_ref, b2_ref, w3_ref, b3_ref, o_ref):
    """Fused Linear->Tanh->Linear->Tanh->Linear->Softmax for one batch tile.

    3 matmuls (MXU, f32 accumulation), tanh/exp/approx-reciprocal (EUP),
    softmax reduce (XLU/VPU) — all in one body; weights stay VMEM-resident
    across grid steps via constant index_maps.
    """
    cdt = w1_ref.dtype                     # MXU operand dtype (bf16 or f32)
    x = x_ref[...].astype(cdt)             # cheap VPU cast; HBM read stays f32

    h1 = jnp.tanh(
        jnp.dot(x, w1_ref[...], preferred_element_type=jnp.float32) + b1_ref[...]
    )
    h2 = jnp.tanh(
        jnp.dot(h1.astype(cdt), w2_ref[...], preferred_element_type=jnp.float32)
        + b2_ref[...]
    )
    logits = (
        jnp.dot(h2.astype(cdt), w3_ref[...], preferred_element_type=jnp.float32)
        + b3_ref[...]
    )

    # Numerically-stable softmax over the (un-padded) action axis, in f32.
    m = jnp.max(logits, axis=-1, keepdims=True)
    e = jnp.exp(logits - m)
    denom = jnp.sum(e, axis=-1, keepdims=True)
    inv = pl.reciprocal(denom, approx=True)   # EUP slot; ~1e-3 row-sum error
    o_ref[...] = (e * inv).astype(o_ref.dtype)


@functools.partial(jax.jit, static_argnames=("tile_b",))
def actor_forward(state, w1, b1, w2, b2, w3, b3, *, tile_b=None):
    B, S = state.shape
    H = w1.shape[1]
    A = w3.shape[1]

    granule = 8                               # f32 sublane granule (batch axis)
    if tile_b is None:
        tile_b = _auto_tile_rows(B, granule)
    tb = min(_round_up(tile_b, granule), _round_up(B, granule))
    Bp = _round_up(B, tb)

    # Only the batch axis is ever padded; padded rows are sliced off below
    # (they produce a harmless uniform softmax row).
    x = state if Bp == B else jnp.pad(state, ((0, Bp - B), (0, 0)))

    def _itemsize(a):
        return jnp.dtype(a.dtype).itemsize

    cost = pl.CostEstimate(
        flops=2 * Bp * (S * H + H * H + H * A),
        transcendentals=Bp * (2 * H + A),
        bytes_accessed=(
            Bp * S * _itemsize(state)
            + (S * H + H * H + H * A) * _itemsize(w1)
            + (2 * H + A) * _itemsize(b1)
            + Bp * A * 4
        ),
    )

    out = pl.pallas_call(
        actor_kernel,
        out_shape=jax.ShapeDtypeStruct((Bp, A), jnp.float32),
        grid=(Bp // tb,),
        in_specs=[
            pl.BlockSpec((tb, S), lambda i: (i, 0)),   # state: tiled over batch
            pl.BlockSpec((S, H), lambda i: (0, 0)),    # weights/biases: resident
            pl.BlockSpec((1, H), lambda i: (0, 0)),
            pl.BlockSpec((H, H), lambda i: (0, 0)),
            pl.BlockSpec((1, H), lambda i: (0, 0)),
            pl.BlockSpec((H, A), lambda i: (0, 0)),
            pl.BlockSpec((1, A), lambda i: (0, 0)),
        ],
        out_specs=pl.BlockSpec((tb, A), lambda i: (i, 0)),
        compiler_params=pltpu.CompilerParams(
            dimension_semantics=("parallel",),
        ),
        cost_estimate=cost,
    )(x, w1, b1, w2, b2, w3, b3)

    return out if Bp == B else out[:B]


def init_linear(key, fan_in, fan_out):
    # Mimic PyTorch nn.Linear default init: U(-1/sqrt(fan_in), 1/sqrt(fan_in)).
    kw, kb = jax.random.split(key)
    bound = 1.0 / jnp.sqrt(jnp.float32(fan_in))
    w = jax.random.uniform(kw, (fan_in, fan_out), jnp.float32, -bound, bound)
    b = jax.random.uniform(kb, (1, fan_out), jnp.float32, -bound, bound)
    return w, b


def actor_reference(state, w1, b1, w2, b2, w3, b3):
    h1 = jnp.tanh(state @ w1 + b1)
    h2 = jnp.tanh(h1 @ w2 + b2)
    return jax.nn.softmax(h2 @ w3 + b3, axis=-1)


if __name__ == "__main__":
    batch = 64
    state_size = 16
    hidsize = 32
    action_size = 8

    key = jax.random.PRNGKey(0)
    k_x, k1, k2, k3 = jax.random.split(key, 4)

    state = jax.random.normal(k_x, (batch, state_size), jnp.float32)
    w1f, b1 = init_linear(k1, state_size, hidsize)
    w2f, b2 = init_linear(k2, hidsize, hidsize)
    w3f, b3 = init_linear(k3, hidsize, action_size)

    # One-time (hoisted) cast of the weight pytree to the MXU operand dtype;
    # biases stay f32 (they add into the f32 accumulators).
    cdt = default_compute_dtype()
    w1, w2, w3 = (w.astype(cdt) for w in (w1f, w2f, w3f))

    # approx reciprocal + (possibly) bf16 matmul operands perturb outputs at
    # the ~1e-3 level, so loosen the tolerance accordingly.
    tol = 2e-2 if cdt == jnp.bfloat16 else 5e-3

    out = jax.block_until_ready(actor_forward(state, w1, b1, w2, b2, w3, b3))
    ref = actor_reference(state, w1f, b1, w2f, b2, w3f, b3)
    assert out.shape == (batch, action_size)
    assert jnp.allclose(out, ref, atol=tol, rtol=tol)
    assert jnp.allclose(jnp.sum(out, axis=-1), 1.0, atol=tol)

    # Second call exercises a multi-step grid (grid=(2,)) and ragged batch
    # padding (20 rows -> 32 padded, 16-row tiles).
    state2 = jax.random.normal(jax.random.PRNGKey(1), (20, state_size), jnp.float32)
    out2 = jax.block_until_ready(
        actor_forward(state2, w1, b1, w2, b2, w3, b3, tile_b=16)
    )
    ref2 = actor_reference(state2, w1f, b1, w2f, b2, w3f, b3)
    assert out2.shape == (20, action_size)
    assert jnp.allclose(out2, ref2, atol=tol, rtol=tol)
    assert jnp.allclose(jnp.sum(out2, axis=-1), 1.0, atol=tol)

    print("KERNEL_OK")
</pallas_src>

<mosaic_0001>
module attributes {stable_mosaic.version = 11 : i64} {
  func.func @actor_kernel(%arg0: i32, %arg1: memref<64x16xf32, #tpu.memory_space<vmem>>, %arg2: memref<16x32xf32, #tpu.memory_space<vmem>>, %arg3: memref<1x32xf32, #tpu.memory_space<vmem>>, %arg4: memref<32x32xf32, #tpu.memory_space<vmem>>, %arg5: memref<1x32xf32, #tpu.memory_space<vmem>>, %arg6: memref<32x8xf32, #tpu.memory_space<vmem>>, %arg7: memref<1x8xf32, #tpu.memory_space<vmem>>, %arg8: memref<64x8xf32, #tpu.memory_space<vmem>>) attributes {dimension_semantics = [#tpu.dimension_semantics<parallel>], iteration_bounds = array<i64: 1>, scalar_prefetch = 0 : i64, scratch_operands = 0 : i64, tpu.core_type = #tpu.core_type<tc>, window_params = [{transform_indices = @transform_0, window_bounds = array<i64: 64, 16>}, {pipeline_mode = #tpu.pipeline_mode<synchronous>, transform_indices = @transform_1, window_bounds = array<i64: 16, 32>}, {pipeline_mode = #tpu.pipeline_mode<synchronous>, transform_indices = @transform_2, window_bounds = array<i64: 1, 32>}, {pipeline_mode = #tpu.pipeline_mode<synchronous>, transform_indices = @transform_3, window_bounds = array<i64: 32, 32>}, {pipeline_mode = #tpu.pipeline_mode<synchronous>, transform_indices = @transform_4, window_bounds = array<i64: 1, 32>}, {pipeline_mode = #tpu.pipeline_mode<synchronous>, transform_indices = @transform_5, window_bounds = array<i64: 32, 8>}, {pipeline_mode = #tpu.pipeline_mode<synchronous>, transform_indices = @transform_6, window_bounds = array<i64: 1, 8>}, {transform_indices = @transform_7, window_bounds = array<i64: 64, 8>}]} {
    %c0 = arith.constant 0 : index
    %c0_0 = arith.constant 0 : index
    %0 = vector.load %arg1[%c0, %c0_0] : memref<64x16xf32, #tpu.memory_space<vmem>>, vector<64x16xf32>
    %c0_1 = arith.constant 0 : index
    %c0_2 = arith.constant 0 : index
    %1 = vector.load %arg2[%c0_1, %c0_2] : memref<16x32xf32, #tpu.memory_space<vmem>>, vector<16x32xf32>
    %cst = arith.constant dense<0.000000e+00> : vector<64x32xf32>
    %2 = tpu.matmul %0, %1, %cst {dimension_numbers = #tpu.dot_dimension_numbers<[1], [0], [0], [1], [0, 0, 1, 1], [], []>} : vector<64x16xf32>, vector<16x32xf32>, vector<64x32xf32> -> vector<64x32xf32>
    %c0_3 = arith.constant 0 : index
    %c0_4 = arith.constant 0 : index
    %3 = vector.load %arg3[%c0_3, %c0_4] : memref<1x32xf32, #tpu.memory_space<vmem>>, vector<1x32xf32>
    %4 = vector.broadcast %3 : vector<1x32xf32> to vector<64x32xf32>
    %5 = arith.addf %2, %4 : vector<64x32xf32>
    %6 = math.tanh %5 : vector<64x32xf32>
    %c0_5 = arith.constant 0 : index
    %c0_6 = arith.constant 0 : index
    %7 = vector.load %arg4[%c0_5, %c0_6] : memref<32x32xf32, #tpu.memory_space<vmem>>, vector<32x32xf32>
    %cst_7 = arith.constant dense<0.000000e+00> : vector<64x32xf32>
    %8 = tpu.matmul %6, %7, %cst_7 {dimension_numbers = #tpu.dot_dimension_numbers<[1], [0], [0], [1], [0, 0, 1, 1], [], []>} : vector<64x32xf32>, vector<32x32xf32>, vector<64x32xf32> -> vector<64x32xf32>
    %c0_8 = arith.constant 0 : index
    %c0_9 = arith.constant 0 : index
    %9 = vector.load %arg5[%c0_8, %c0_9] : memref<1x32xf32, #tpu.memory_space<vmem>>, vector<1x32xf32>
    %10 = vector.broadcast %9 : vector<1x32xf32> to vector<64x32xf32>
    %11 = arith.addf %8, %10 : vector<64x32xf32>
    %12 = math.tanh %11 : vector<64x32xf32>
    %c0_10 = arith.constant 0 : index
    %c0_11 = arith.constant 0 : index
    %13 = vector.load %arg6[%c0_10, %c0_11] : memref<32x8xf32, #tpu.memory_space<vmem>>, vector<32x8xf32>
    %cst_12 = arith.constant dense<0.000000e+00> : vector<64x8xf32>
    %14 = tpu.matmul %12, %13, %cst_12 {dimension_numbers = #tpu.dot_dimension_numbers<[1], [0], [0], [1], [0, 0, 1, 1], [], []>} : vector<64x32xf32>, vector<32x8xf32>, vector<64x8xf32> -> vector<64x8xf32>
    %c0_13 = arith.constant 0 : index
    %c0_14 = arith.constant 0 : index
    %15 = vector.load %arg7[%c0_13, %c0_14] : memref<1x8xf32, #tpu.memory_space<vmem>>, vector<1x8xf32>
    %16 = vector.broadcast %15 : vector<1x8xf32> to vector<64x8xf32>
    %17 = arith.addf %14, %16 : vector<64x8xf32>
    %cst_15 = arith.constant dense<0xFF800000> : vector<64xf32>
    %18 = vector.multi_reduction <maximumf>, %17, %cst_15 [1] : vector<64x8xf32> to vector<64xf32>
    %19 = vector.shape_cast %18 : vector<64xf32> to vector<64x1xf32>
    %20 = vector.broadcast %19 : vector<64x1xf32> to vector<64x8xf32>
    %21 = arith.subf %17, %20 : vector<64x8xf32>
    %22 = math.exp %21 : vector<64x8xf32>
    %cst_16 = arith.constant dense<0.000000e+00> : vector<64xf32>
    %23 = vector.multi_reduction <add>, %22, %cst_16 [1] : vector<64x8xf32> to vector<64xf32>
    %24 = vector.shape_cast %23 : vector<64xf32> to vector<64x1xf32>
    %25 = tpu.reciprocal %24 {approx = true} : vector<64x1xf32> -> vector<64x1xf32>
    %26 = vector.broadcast %25 : vector<64x1xf32> to vector<64x8xf32>
    %27 = arith.mulf %22, %26 : vector<64x8xf32>
    %c0_17 = arith.constant 0 : index
    %c0_18 = arith.constant 0 : index
    %28 = vector.load %arg8[%c0_17, %c0_18] : memref<64x8xf32, #tpu.memory_space<vmem>>, vector<64x8xf32>
    tpu.vector_store %arg8[%c0_17, %c0_18], %27 {strides = array<i32>} : memref<64x8xf32, #tpu.memory_space<vmem>>, vector<64x8xf32>,
    return
  }
  func.func @transform_0(%arg0: i32) -> (i32, i32) {
    %c0_i32 = arith.constant 0 : i32
    %c0_i32_0 = arith.constant 0 : i32
    return %arg0, %c0_i32 : i32, i32
  }
  func.func @transform_1(%arg0: i32) -> (i32, i32) {
    %c0_i32 = arith.constant 0 : i32
    %c0_i32_0 = arith.constant 0 : i32
    %c0_i32_1 = arith.constant 0 : i32
    return %c0_i32, %c0_i32_0 : i32, i32
  }
  func.func @transform_2(%arg0: i32) -> (i32, i32) {
    %c0_i32 = arith.constant 0 : i32
    %c0_i32_0 = arith.constant 0 : i32
    %c0_i32_1 = arith.constant 0 : i32
    return %c0_i32, %c0_i32_0 : i32, i32
  }
  func.func @transform_3(%arg0: i32) -> (i32, i32) {
    %c0_i32 = arith.constant 0 : i32
    %c0_i32_0 = arith.constant 0 : i32
    %c0_i32_1 = arith.constant 0 : i32
    return %c0_i32, %c0_i32_0 : i32, i32
  }
  func.func @transform_4(%arg0: i32) -> (i32, i32) {
    %c0_i32 = arith.constant 0 : i32
    %c0_i32_0 = arith.constant 0 : i32
    %c0_i32_1 = arith.constant 0 : i32
    return %c0_i32, %c0_i32_0 : i32, i32
  }
  func.func @transform_5(%arg0: i32) -> (i32, i32) {
    %c0_i32 = arith.constant 0 : i32
    %c0_i32_0 = arith.constant 0 : i32
    %c0_i32_1 = arith.constant 0 : i32
    return %c0_i32, %c0_i32_0 : i32, i32
  }
  func.func @transform_6(%arg0: i32) -> (i32, i32) {
    %c0_i32 = arith.constant 0 : i32
    %c0_i32_0 = arith.constant 0 : i32
    %c0_i32_1 = arith.constant 0 : i32
    return %c0_i32, %c0_i32_0 : i32, i32
  }
  func.func @transform_7(%arg0: i32) -> (i32, i32) {
    %c0_i32 = arith.constant 0 : i32
    %c0_i32_0 = arith.constant 0 : i32
    return %arg0, %c0_i32 : i32, i32
  }
}

</mosaic_0001>

<bundles_post_ra>
// kernel: actor_forward.1
= control target key start
LH: loop header
LB: loop body
LE: loop exit
PB: predicated region body
PF: predicated region fallthrough
CT: control target
= control target key end

     0   :  { %vm43_vm0 = vcmask 130048   ;;  %vm192_vm1 = vcmask 261120   ;;  %vm470_vm2 = vcmask 64512   ;;  %s949_s1 = inlined_call_operand.vmem [shape: f32[16,32], index: 1, kind: input, shape index: {}]   ;;  %s950_s0 = inlined_call_operand.vmem [shape: f32[64,16], index: 0, kind: input, shape index: {}]   ;;  %s951_s3 = inlined_call_operand.vmem [shape: f32[32,32], index: 3, kind: input, shape index: {}]   ;;  %s952_s2 = inlined_call_operand.vmem [shape: f32[1,32], index: 2, kind: input, shape index: {}]   ;;  %s953_s5 = inlined_call_operand.vmem [shape: f32[32,8], index: 5, kind: input, shape index: {}]   ;;  %s954_s4 = inlined_call_operand.vmem [shape: f32[1,32], index: 4, kind: input, shape index: {}]   ;;  %s955_s6 = inlined_call_operand.vmem [shape: f32[1,8], index: 6, kind: input, shape index: {}]   ;;  %s956_s7 = inlined_call_operand.vmem [shape: f32[64,8], index: 7, kind: output, shape index: {}]  }
   0x1   :  { %v34_v0 = vld [vmem:[%s949_s1] sm:$0xff]  ;;  %v35_v1 = vld [vmem:[%s949_s1 + $0x8] sm:$0xff]  ;;  %v28_v7 = vld [vmem:[%s950_s0 + $0x10] sm:$0xff] }
   0x2   :  { %v26_v2 = vld [vmem:[%s950_s0] sm:$0xff]  ;;  %v688_v3 = vpack.c.bf16 %v35_v1, %v34_v0  ;;  %v27_v5 = vld [vmem:[%s950_s0 + $0x8] sm:$0xff]  ;;  %v32_v8 = vld [vmem:[%s950_s0 + $0x30] sm:$0xff] }
   0x3   :  { %636 = vmatprep.mubr.msk.f32.mxu0 %vm43_vm0, %v26_v2  ;;  %v30_v4 = vld [vmem:[%s950_s0 + $0x20] sm:$0xff]  ;;  %v31_v6 = vld [vmem:[%s950_s0 + $0x28] sm:$0xff]  ;;  %v29_v9 = vld [vmem:[%s950_s0 + $0x18] sm:$0xff] }
   0x4   :  { %689 = vmatprep.subr.bf16.mxu0 %v688_v3  ;;  %708 = vmatprep.subr.bf16.mxu1 %v688_v3  ;;  %v33_v10 = vld [vmem:[%s950_s0 + $0x38] sm:$0xff]  ;;  %v181_v11 = vld [vmem:[%s951_s3] sm:$0xff]  ;;  %v182_v12 = vld [vmem:[%s951_s3 + $0x8] sm:$0xff] }
   0x5   :  { %691 = vmatpush3.bf16.msra.mxu0 %v688_v3  ;;  %709 = vmatpush3.bf16.msra.mxu1 %v688_v3  ;;  %v692_v13 = vpack.c.bf16 %v182_v12, %v181_v11  ;;  %v183_v14 = vld [vmem:[%s951_s3 + $0x10] sm:$0xff]  ;;  %v184_v15 = vld [vmem:[%s951_s3 + $0x18] sm:$0xff]  ;;  %v571_v17 = vld [vmem:[%s952_s2] ss:$0 sm:$0xff] }
   0x6   :  { %642 = vmatprep.mubr.msk.f32.mxu1 %vm43_vm0, %v30_v4  ;;  %v696_v16 = vpack.c.bf16 %v184_v15, %v183_v14  ;;  %v330_v42 = vld [vmem:[%s953_s5] sm:$0xff]  ;;  %v331_v43 = vld [vmem:[%s953_s5 + $0x8] sm:$0xff]  ;;  %v332_v45 = vld [vmem:[%s953_s5 + $0x10] sm:$0xff] }
   0x7   :  { %693 = vmatprep.subr.bf16.mxu1 %v692_v13  ;;  %v700_v44 = vpack.c.bf16 %v331_v43, %v330_v42  ;;  %v333_v46 = vld [vmem:[%s953_s5 + $0x18] sm:$0xff]  ;;  %v580_v48 = vld [vmem:[%s954_s4] ss:$0 sm:$0xff] }
   0x8   :  { %637 = vmatmul.mubr.msk.f32.vlgmr.msra.gmra.mrb[0].mxu0 %vm43_vm0, %v27_v5  ;;  %643 = vmatmul.mubr.msk.f32.vlgmr.msra.gmra.mrb[0].mxu1 %vm43_vm0, %v31_v6  ;;  %v704_v47 = vpack.c.bf16 %v333_v46, %v332_v45 }
   0x9   :  { %639 = vmatprep.mubr.msk.f32.mxu0 %vm43_vm0, %v28_v7  ;;  %645 = vmatprep.mubr.msk.f32.mxu1 %vm43_vm0, %v32_v8 }
   0xa   :  { %695 = vmatpush3.bf16.msra.mxu1 %v692_v13  ;;  %701 = vmatprep.subr.bf16.mxu0 %v700_v44 }
   0xb   :  { %697 = vmatprep.subr.bf16.mxu1 %v696_v16  ;;  %703 = vmatpush3.bf16.msra.mxu0 %v700_v44 }
   0xc   :  { %640 = vmatmul.mubr.msk.f32.gmra.mrb[2].mxu0 %vm43_vm0, %v29_v9  ;;  %646 = vmatmul.mubr.msk.f32.gmra.mrb[2].mxu1 %vm43_vm0, %v33_v10  ;;  %v589_v9 = vld [vmem:[%s955_s6] ss:$0 sm:$0xff] }
   0xd   :  { %705 = vmatprep.subr.bf16.mxu0 %v704_v47 }
   0xe   :  { %699 = vmatpush3.bf16.msra.mxu1 %v696_v16 }
   0xf   :  { %707 = vmatpush3.bf16.msra.mxu0 %v704_v47 }
  0xdb   :  { %v638_v18 = vpop.f32.mrb[0].mxu0  ;;  %v644_v19 = vpop.f32.mrb[0].mxu1 }
  0xdc   :  { %v140_v20 = vadd.f32 %v638_v18, %v571_v17  ;;  %v134_v21 = vpop.f32.mrb[1].mxu0  ;;  %v154_v22 = vpop.f32.mrb[1].mxu1  ;;  %v160_v31 = vadd.f32 %v644_v19, %v571_v17 }
  0xdd   :  { %v135_v23 = vadd.f32 %v571_v17, %v134_v21  ;;  %v155_v24 = vadd.f32 %v571_v17, %v154_v22 }
  0xdf   :  { %710 = vtanh.f32 %v135_v23  ;;  %v641_v25 = vpop.f32.mrb[2].mxu0  ;;  %v647_v26 = vpop.f32.mrb[2].mxu1 }
  0xe0   :  { %712 = vtanh.f32 %v140_v20  ;;  %v150_v27 = vadd.f32 %v641_v25, %v571_v17  ;;  %v144_v28 = vpop.f32.mrb[3].mxu0  ;;  %v164_v29 = vpop.f32.mrb[3].mxu1  ;;  %v170_v33 = vadd.f32 %v647_v26, %v571_v17 }
  0xe1   :  { %v145_v30 = vadd.f32 %v571_v17, %v144_v28  ;;  %714 = vtanh.f32 %v155_v24  ;;  %v165_v32 = vadd.f32 %v571_v17, %v164_v29 }
  0xe3   :  { %716 = vtanh.f32 %v145_v30 }
  0xe4   :  { %718 = vtanh.f32 %v150_v27 }
  0xe5   :  { %720 = vtanh.f32 %v160_v31 }
  0xe6   :  { %722 = vtanh.f32 %v165_v32 }
  0xe7   :  { %724 = vtanh.f32 %v170_v33 }
  0xe9   :  { %v711_v34 = vpop.eup %710 }
  0xea   :  { %v713_v35 = vpop.eup %712  ;;  %656 = vmatprep.mubr.msk.f32.mxu1 %vm192_vm1, %v711_v34 }
  0xeb   :  { %657 = vmatmul.mubr.msk.f32.vlgmr.msra.gmra.mrb[4].mxu1 %vm192_vm1, %v713_v35  ;;  %v715_v36 = vpop.eup %714 }
  0xed   :  { %v717_v37 = vpop.eup %716 }
  0xee   :  { %v719_v38 = vpop.eup %718  ;;  %659 = vmatprep.mubr.msk.f32.mxu1 %vm192_vm1, %v717_v37 }
  0xef   :  { %660 = vmatmul.mubr.msk.f32.gmra.mrb[6].mxu1 %vm192_vm1, %v719_v38  ;;  %v721_v39 = vpop.eup %720 }
  0xf0   :  { %662 = vmatprep.mubr.msk.f32.mxu1 %vm192_vm1, %v715_v36  ;;  %v723_v40 = vpop.eup %722 }
  0xf1   :  { %v725_v41 = vpop.eup %724 }
  0xf3   :  { %663 = vmatmul.mubr.msk.f32.gmra.mrb[8].mxu1 %vm192_vm1, %v721_v39 }
  0xf4   :  { %665 = vmatprep.mubr.msk.f32.mxu1 %vm192_vm1, %v723_v40 }
  0xf7   :  { %666 = vmatmul.mubr.msk.f32.gmra.mrb[10].mxu1 %vm192_vm1, %v725_v41 }
 0x1be   :  { %v658_v49 = vpop.f32.mrb[4].mxu1 }
 0x1bf   :  { %v289_v50 = vadd.f32 %v658_v49, %v580_v48  ;;  %v283_v51 = vpop.f32.mrb[5].mxu1 }
 0x1c0   :  { %v284_v52 = vadd.f32 %v580_v48, %v283_v51 }
 0x1c2   :  { %726 = vtanh.f32 %v284_v52  ;;  %v661_v53 = vpop.f32.mrb[6].mxu1 }
 0x1c3   :  { %728 = vtanh.f32 %v289_v50  ;;  %v299_v54 = vadd.f32 %v661_v53, %v580_v48  ;;  %v293_v55 = vpop.f32.mrb[7].mxu1 }
 0x1c4   :  { %v294_v56 = vadd.f32 %v580_v48, %v293_v55 }
 0x1c6   :  { %730 = vtanh.f32 %v294_v56  ;;  %v664_v57 = vpop.f32.mrb[8].mxu1 }
 0x1c7   :  { %732 = vtanh.f32 %v299_v54  ;;  %v309_v58 = vadd.f32 %v664_v57, %v580_v48  ;;  %v303_v59 = vpop.f32.mrb[9].mxu1 }
 0x1c8   :  { %v304_v60 = vadd.f32 %v580_v48, %v303_v59 }
 0x1c9   :  { %734 = vtanh.f32 %v309_v58 }
 0x1ca   :  { %736 = vtanh.f32 %v304_v60  ;;  %v667_v61 = vpop.f32.mrb[10].mxu1 }
 0x1cb   :  { %v319_v62 = vadd.f32 %v667_v61, %v580_v48  ;;  %v313_v63 = vpop.f32.mrb[11].mxu1 }
 0x1cc   :  { %v727_v0 = vpop.eup %726  ;;  %v314_v1 = vadd.f32 %v580_v48, %v313_v63 }
 0x1cd   :  { %v729_v2 = vpop.eup %728  ;;  %738 = vtanh.f32 %v319_v62  ;;  %676 = vmatprep.mubr.msk.f32.mxu0 %vm192_vm1, %v727_v0 }
 0x1ce   :  { %740 = vtanh.f32 %v314_v1  ;;  %677 = vmatmul.mubr.msk.f32.vlgmr.msra.gmra.mrb[4].mxu0 %vm192_vm1, %v729_v2 }
 0x1d0   :  { %v731_v3 = vpop.eup %730 }
 0x1d1   :  { %v733_v4 = vpop.eup %732  ;;  %679 = vmatprep.mubr.msk.f32.mxu0 %vm192_vm1, %v731_v3 }
 0x1d2   :  { %680 = vmatmul.mubr.msk.f32.gmra.mrb[6].mxu0 %vm192_vm1, %v733_v4 }
 0x1d3   :  { %v735_v5 = vpop.eup %734 }
 0x1d4   :  { %v737_v6 = vpop.eup %736 }
 0x1d5   :  { %682 = vmatprep.mubr.msk.f32.mxu0 %vm192_vm1, %v737_v6 }
 0x1d6   :  { %683 = vmatmul.mubr.msk.f32.gmra.mrb[8].mxu0 %vm192_vm1, %v735_v5 }
 0x1d7   :  { %v739_v7 = vpop.eup %738 }
 0x1d8   :  { %v741_v8 = vpop.eup %740 }
 0x1d9   :  { %685 = vmatprep.mubr.msk.f32.mxu0 %vm192_vm1, %v741_v8 }
 0x1da   :  { %686 = vmatmul.mubr.msk.f32.gmra.mrb[10].mxu0 %vm192_vm1, %v739_v7 }
 0x2a1   :  { %v678_v10 = vpop.f32.mrb[4].mxu0 }
 0x2a2   :  { %v437_v11 = vadd.f32 %v678_v10, %v589_v9  ;;  %v431_v12 = vpop.f32.mrb[5].mxu0 }
 0x2a3   :  { %v432_v13 = vadd.f32 %v589_v9, %v431_v12 }
 0x2a4   :  { %v474_v14 = vsel %vm470_vm2, %v437_v11, -inf }
 0x2a5   :  { %475 = vmax.xlane.f32.xlu0 %v474_v14  ;;  %v681_v15 = vpop.f32.mrb[6].mxu0  ;;  %v471_v20 = vsel %vm470_vm2, %v432_v13, -inf }
 0x2a6   :  { %v447_v16 = vadd.f32 %v681_v15, %v589_v9  ;;  %v441_v17 = vpop.f32.mrb[7].mxu0 }
 0x2a7   :  { %v442_v18 = vadd.f32 %v589_v9, %v441_v17 }
 0x2a8   :  { %v480_v19 = vsel %vm470_vm2, %v447_v16, -inf }
 0x2a9   :  { %481 = vmax.xlane.f32.xlu1 %v480_v19  ;;  %v684_v21 = vpop.f32.mrb[8].mxu0  ;;  %472 = vmax.xlane.f32.xlu0 %v471_v20  ;;  %v477_v25 = vsel %vm470_vm2, %v442_v18, -inf }
 0x2aa   :  { %v451_v22 = vpop.f32.mrb[9].mxu0  ;;  %v457_v24 = vadd.f32 %v684_v21, %v589_v9 }
 0x2ab   :  { %v452_v23 = vadd.f32 %v589_v9, %v451_v22 }
 0x2ac   :  { %v486_v31 = vsel %vm470_vm2, %v457_v24, -inf }
 0x2ad   :  { %v687_v26 = vpop.f32.mrb[10].mxu0  ;;  %478 = vmax.xlane.f32.xlu1 %v477_v25  ;;  %v483_v27 = vsel %vm470_vm2, %v452_v23, -inf }
 0x2ae   :  { %v461_v28 = vpop.f32.mrb[11].mxu0  ;;  %484 = vmax.xlane.f32.xlu0 %v483_v27  ;;  %v467_v30 = vadd.f32 %v687_v26, %v589_v9 }
 0x2af   :  { %v462_v29 = vadd.f32 %v589_v9, %v461_v28 }
 0x2b0   :  { %v492_v33 = vsel %vm470_vm2, %v467_v30, -inf }
 0x2b1   :  { %487 = vmax.xlane.f32.xlu1 %v486_v31  ;;  %v489_v32 = vsel %vm470_vm2, %v462_v29, -inf }
 0x2b2   :  { %490 = vmax.xlane.f32.xlu0 %v489_v32 }
 0x2b5   :  { %493 = vmax.xlane.f32.xlu1 %v492_v33 }
 0x332   :  { %v476_v34 = vpop.xlane.xlu0 %475 }
 0x333   :  { %v496_v35 = vsub.f32 %v437_v11, %v476_v34 }
 0x335   :  { %v505_v36 = vmul.f32 1.442695, %v496_v35 }
 0x336   :  { %v482_v37 = vpop.xlane.xlu1 %481  ;;  %v473_v38 = vpop.xlane.xlu0 %472 }
 0x337   :  { %742 = vpow2.f32 %v505_v36  ;;  %v498_v39 = vsub.f32 %v447_v16, %v482_v37  ;;  %v495_v40 = vsub.f32 %v432_v13, %v473_v38 }
 0x339   :  { %v509_v41 = vmul.f32 1.442695, %v498_v39  ;;  %v503_v42 = vmul.f32 1.442695, %v495_v40 }
 0x33a   :  { %v479_v43 = vpop.xlane.xlu1 %478 }
 0x33b   :  { %744 = vpow2.f32 %v509_v41  ;;  %v497_v44 = vsub.f32 %v442_v18, %v479_v43  ;;  %v485_v45 = vpop.xlane.xlu0 %484 }
 0x33c   :  { %746 = vpow2.f32 %v503_v42  ;;  %v499_v46 = vsub.f32 %v452_v23, %v485_v45 }
 0x33d   :  { %v507_v47 = vmul.f32 1.442695, %v497_v44 }
 0x33e   :  { %v511_v48 = vmul.f32 1.442695, %v499_v46  ;;  %v488_v49 = vpop.xlane.xlu1 %487 }
 0x33f   :  { %748 = vpow2.f32 %v507_v47  ;;  %v500_v50 = vsub.f32 %v457_v24, %v488_v49  ;;  %v491_v51 = vpop.xlane.xlu0 %490 }
 0x340   :  { %v501_v52 = vsub.f32 %v462_v29, %v491_v51  ;;  %750 = vpow2.f32 %v511_v48 }
 0x341   :  { %v743_v53 = vpop.eup %742  ;;  %v513_v54 = vmul.f32 1.442695, %v500_v50 }
 0x342   :  { %v515_v55 = vmul.f32 1.442695, %v501_v52  ;;  %v494_v56 = vpop.xlane.xlu1 %493  ;;  %v522_v57 = vsel %vm470_vm2, %v743_v53, 0.0 }
 0x343   :  { %752 = vpow2.f32 %v513_v54  ;;  %v502_v58 = vsub.f32 %v467_v30, %v494_v56  ;;  %523 = vadd.xlane.f32.xlu1 %v522_v57 }
 0x344   :  { %754 = vpow2.f32 %v515_v55 }
 0x345   :  { %v745_v59 = vpop.eup %744  ;;  %v517_v60 = vmul.f32 1.442695, %v502_v58 }
 0x346   :  { %v747_v61 = vpop.eup %746  ;;  %v528_v62 = vsel %vm470_vm2, %v745_v59, 0.0 }
 0x347   :  { %756 = vpow2.f32 %v517_v60  ;;  %529 = vadd.xlane.f32.xlu1 %v528_v62  ;;  %v519_v63 = vsel %vm470_vm2, %v747_v61, 0.0 }
 0x348   :  { %520 = vadd.xlane.f32.xlu0 %v519_v63 }
 0x349   :  { %v749_v0 = vpop.eup %748 }
 0x34a   :  { %v525_v1 = vsel %vm470_vm2, %v749_v0, 0.0  ;;  %v751_v2 = vpop.eup %750 }
 0x34b   :  { %v531_v5 = vsel %vm470_vm2, %v751_v2, 0.0 }
 0x34c   :  { %526 = vadd.xlane.f32.xlu0 %v525_v1 }
 0x34d   :  { %v753_v3 = vpop.eup %752 }
 0x34e   :  { %v534_v4 = vsel %vm470_vm2, %v753_v3, 0.0  ;;  %v755_v6 = vpop.eup %754 }
 0x34f   :  { %535 = vadd.xlane.f32.xlu1 %v534_v4  ;;  %v537_v9 = vsel %vm470_vm2, %v755_v6, 0.0 }
 0x350   :  { %532 = vadd.xlane.f32.xlu0 %v531_v5 }
 0x351   :  { %v757_v7 = vpop.eup %756 }
 0x352   :  { %v540_v8 = vsel %vm470_vm2, %v757_v7, 0.0 }
 0x353   :  { %541 = vadd.xlane.f32.xlu1 %v540_v8 }
 0x354   :  { %538 = vadd.xlane.f32.xlu0 %v537_v9 }
 0x3d0   :  { %v524_v10 = vpop.xlane.xlu1 %523 }
 0x3d1   :  { %758 = vrcp.f32 %v524_v10 }
 0x3d4   :  { %v530_v11 = vpop.xlane.xlu1 %529 }
 0x3d5   :  { %760 = vrcp.f32 %v530_v11  ;;  %v521_v12 = vpop.xlane.xlu0 %520 }
 0x3d6   :  { %762 = vrcp.f32 %v521_v12 }
 0x3d9   :  { %v527_v13 = vpop.xlane.xlu0 %526 }
 0x3da   :  { %764 = vrcp.f32 %v527_v13 }
 0x3db   :  { %v759_v14 = vpop.eup %758 }
 0x3dc   :  { %v552_v15 = vmul.f32 %v759_v14, %v743_v53  ;;  %v536_v16 = vpop.xlane.xlu1 %535 }
 0x3dd   :  { %766 = vrcp.f32 %v536_v16  ;;  %v533_v17 = vpop.xlane.xlu0 %532 }
 0x3de   :  { %560 = vst.msk [vmem:[%s956_s7 + $0x8] sm:$0xff] %vm470_vm2, %v552_v15  ;;  %768 = vrcp.f32 %v533_v17 }
 0x3df   :  { %v761_v18 = vpop.eup %760 }
 0x3e0   :  { %v763_v19 = vpop.eup %762  ;;  %v554_v20 = vmul.f32 %v761_v18, %v745_v59  ;;  %v542_v21 = vpop.xlane.xlu1 %541 }
 0x3e1   :  { %v551_v22 = vmul.f32 %v763_v19, %v747_v61  ;;  %770 = vrcp.f32 %v542_v21  ;;  %v539_v23 = vpop.xlane.xlu0 %538 }
 0x3e2   :  { %562 = vst.msk [vmem:[%s956_s7 + $0x18] sm:$0xff] %vm470_vm2, %v554_v20  ;;  %772 = vrcp.f32 %v539_v23 }
 0x3e3   :  { %559 = vst.msk [vmem:[%s956_s7] sm:$0xff] %vm470_vm2, %v551_v22 }
 0x3e4   :  { %v765_v24 = vpop.eup %764 }
 0x3e5   :  { %v553_v25 = vmul.f32 %v765_v24, %v749_v0 }
 0x3e7   :  { %v767_v26 = vpop.eup %766  ;;  %561 = vst.msk [vmem:[%s956_s7 + $0x10] sm:$0xff] %vm470_vm2, %v553_v25 }
 0x3e8   :  { %v769_v27 = vpop.eup %768  ;;  %v556_v28 = vmul.f32 %v767_v26, %v753_v3 }
 0x3e9   :  { %v555_v29 = vmul.f32 %v769_v27, %v751_v2 }
 0x3ea   :  { %564 = vst.msk [vmem:[%s956_s7 + $0x28] sm:$0xff] %vm470_vm2, %v556_v28 }
 0x3eb   :  { %v771_v30 = vpop.eup %770  ;;  %563 = vst.msk [vmem:[%s956_s7 + $0x20] sm:$0xff] %vm470_vm2, %v555_v29 }
 0x3ec   :  { %v773_v31 = vpop.eup %772  ;;  %v558_v32 = vmul.f32 %v771_v30, %v757_v7 }
 0x3ed   :  { %v557_v33 = vmul.f32 %v773_v31, %v755_v6 }
 0x3ee   :  { %566 = vst.msk [vmem:[%s956_s7 + $0x38] sm:$0xff] %vm470_vm2, %v558_v32 }
 0x3ef   :  { %565 = vst.msk [vmem:[%s956_s7 + $0x30] sm:$0xff] %vm470_vm2, %v557_v33 }

</bundles_post_ra>
